<compile_context>
chip_gen: v5e
topology: v5e:2x2
jax: 0.10.0
libtpu: 0.0.40
codegen_flags: <defaults>
</compile_context>

<pallas_src>
import jax
import jax.numpy as jnp
from jax.experimental import pallas as pl
from jax.experimental.pallas import tpu as pltpu


# ---------------------------------------------------------------------------
# Kernels
# ---------------------------------------------------------------------------

def _readout_kernel_single_k(x_ref, w_ref, b_ref, tau_ref, mem_ref, out_ref):
    """Fast path: the whole Linear reduction fits in one K tile."""
    d = jnp.dot(x_ref[...], w_ref[...], preferred_element_type=jnp.float32)
    d = d + b_ref[...].astype(jnp.float32)                       # (tm, tn)
    alpha = jax.nn.sigmoid(tau_ref[...].astype(jnp.float32))     # (1, tn), EUP
    mem = mem_ref[...].astype(jnp.float32)
    # mem*alpha + (1-alpha)*d  ==  d + alpha*(mem - d)   (one fewer vmul)
    out_ref[...] = (d + alpha * (mem - d)).astype(out_ref.dtype)


def _readout_kernel_multi_k(x_ref, w_ref, b_ref, tau_ref, mem_ref,
                            out_ref, acc_ref):
    """General path: K is split; f32 accumulator seeded with the bias."""
    k = pl.program_id(2)

    @pl.when(k == 0)
    def _init():
        acc_ref[...] = jnp.broadcast_to(
            b_ref[...].astype(jnp.float32), acc_ref.shape)

    acc_ref[...] += jnp.dot(x_ref[...], w_ref[...],
                            preferred_element_type=jnp.float32)

    @pl.when(k == pl.num_programs(2) - 1)
    def _finalize():
        d = acc_ref[...]
        alpha = jax.nn.sigmoid(tau_ref[...].astype(jnp.float32))
        mem = mem_ref[...].astype(jnp.float32)
        out_ref[...] = (d + alpha * (mem - d)).astype(out_ref.dtype)


# ---------------------------------------------------------------------------
# Tile selection (VMEM-budget aware, generation-portable)
# ---------------------------------------------------------------------------

# Working-set budget for tiles. Kept well under v7x's 64 MiB physical VMEM;
# v5e/v6e (128 MiB) have even more headroom.
_VMEM_TILE_BUDGET = 48 * 1024 * 1024


def _divisor_tile(dim, candidates):
    """Largest candidate that divides `dim`, else the full extent (always legal)."""
    for c in candidates:
        if c <= dim and dim % c == 0:
            return c
    return dim


def _working_set_bytes(tm, tn, tk, k_steps, x_bytes, w_bytes, state_bytes):
    ws = 2 * (tm * tk * x_bytes          # x tile (double-buffered)
              + tk * tn * w_bytes        # weight tile
              + tm * tn * state_bytes    # mem tile
              + 2 * tn * 4)              # bias + tau tiles (f32)
    ws += 2 * tm * tn * state_bytes      # output tile (double-buffered writeback)
    if k_steps > 1:
        ws += tm * tn * 4                # f32 accumulator scratch
    return ws


def _select_tiles(B, N, K, x_bytes, w_bytes, state_bytes,
                  vmem_budget=_VMEM_TILE_BUDGET):
    tm = _divisor_tile(B, (512, 256, 128, 64, 32, 16, 8))

    # Prefer the full reduction (single K step, no scratch, fills the 256-wide
    # MXU on v6e/v7x), then 256-multiples, then 128.
    tk_candidates = [K] + [c for c in (2048, 1024, 512, 256, 128)
                           if c < K and K % c == 0]
    tn_candidates = [c for c in (2048, 1024, 512, 256, 128) if N % c == 0] or [N]

    for tk in tk_candidates:
        k_steps = -(-K // tk)
        for tn in tn_candidates:
            if _working_set_bytes(tm, tn, tk, k_steps, x_bytes, w_bytes,
                                  state_bytes) <= vmem_budget:
                return tm, tn, tk
    return tm, tn_candidates[-1], tk_candidates[-1]


def _ensure_two_parallel_tiles(B, N, tm, tn):
    """Shrink a tile so both v7x TensorCores get work (>= 2 parallel tiles)."""
    if (B // tm) * (N // tn) >= 2:
        return tm, tn
    if tn > 128 and N % 128 == 0 and N // 128 >= 2:
        return tm, 128
    if tm > 8 and tm % 2 == 0 and B % (tm // 2) == 0:
        return tm // 2, tn
    return tm, tn


# ---------------------------------------------------------------------------
# Wrappers
# ---------------------------------------------------------------------------

def prepare_readout_params(weight, bias, tau_m, *, compute_dtype=jnp.bfloat16):
    """One-time parameter prep — call once and keep in the param pytree.

    weight: (output_dim, input_dim) PyTorch nn.Linear layout.
    Returns (w_kn, b_2d, tau_2d) with w_kn in (K, N) lane-dense layout and in
    the MXU compute dtype (bf16 by default — a flagged modeling decision;
    pass compute_dtype=jnp.float32 for exact f32 weights).
    """
    w_kn = jnp.asarray(weight).T.astype(compute_dtype)        # (K, N)
    b_2d = jnp.asarray(bias, jnp.float32).reshape(1, -1)      # (1, N)
    tau_2d = jnp.asarray(tau_m, jnp.float32).reshape(1, -1)   # (1, N)
    return w_kn, b_2d, tau_2d


def readout_integrator_forward(input_spike, w_kn, b_2d, tau_2d, mem):
    """One forward step of ReadoutIntegrator.

    Args:
      input_spike: (B, input_dim)  spikes (any dtype; cast to the weight dtype)
      w_kn:        (input_dim, output_dim)  pre-transposed weight (prepare_readout_params)
      b_2d:        (1, output_dim)  f32 bias
      tau_2d:      (1, output_dim)  f32 tau_m
      mem:         (B, output_dim)  membrane state.  NOTE: its buffer is donated
                   into the output (in-place update); do not read it afterwards.
    Returns:
      mem_new:     (B, output_dim), same dtype as mem.
    """
    B, K = input_spike.shape
    Kw, N = w_kn.shape
    assert K == Kw, (K, Kw)

    x = input_spike.astype(w_kn.dtype)   # 0/1 spikes are exact in bf16

    tm, tn, tk = _select_tiles(B, N, K,
                               x.dtype.itemsize, w_kn.dtype.itemsize,
                               mem.dtype.itemsize)
    tm, tn = _ensure_two_parallel_tiles(B, N, tm, tn)
    k_steps = -(-K // tk)

    ws = _working_set_bytes(tm, tn, tk, k_steps,
                            x.dtype.itemsize, w_kn.dtype.itemsize,
                            mem.dtype.itemsize)
    # Explicit scoped-VMEM budget: raises the 16/32 MiB defaults on v5e/v6e,
    # stays under v7x's 64 MiB physical VMEM.
    vmem_limit = int(min(max(2 * ws, 32 * 1024 * 1024), 56 * 1024 * 1024))

    out_shape = jax.ShapeDtypeStruct((B, N), mem.dtype)

    if k_steps == 1:
        # Fast path: no accumulator scratch, no pl.when phases.
        return pl.pallas_call(
            _readout_kernel_single_k,
            out_shape=out_shape,
            grid=(B // tm, N // tn),
            in_specs=[
                pl.BlockSpec((tm, tk), lambda i, j: (i, 0)),   # input_spike
                pl.BlockSpec((tk, tn), lambda i, j: (0, j)),   # weight (K, N)
                pl.BlockSpec((1, tn), lambda i, j: (0, j)),    # bias
                pl.BlockSpec((1, tn), lambda i, j: (0, j)),    # tau_m
                pl.BlockSpec((tm, tn), lambda i, j: (i, j)),   # mem (state)
            ],
            out_specs=pl.BlockSpec((tm, tn), lambda i, j: (i, j)),
            input_output_aliases={4: 0},     # mem -> mem_new (in-place)
            compiler_params=pltpu.CompilerParams(
                dimension_semantics=("parallel", "parallel"),
                vmem_limit_bytes=vmem_limit),
        )(x, w_kn, b_2d, tau_2d, mem)

    # General path: split K reduction with a bias-seeded f32 accumulator.
    return pl.pallas_call(
        _readout_kernel_multi_k,
        out_shape=out_shape,
        grid=(B // tm, N // tn, k_steps),
        in_specs=[
            pl.BlockSpec((tm, tk), lambda i, j, k: (i, k)),   # input_spike
            pl.BlockSpec((tk, tn), lambda i, j, k: (k, j)),   # weight (K, N)
            pl.BlockSpec((1, tn), lambda i, j, k: (0, j)),    # bias
            pl.BlockSpec((1, tn), lambda i, j, k: (0, j)),    # tau_m
            pl.BlockSpec((tm, tn), lambda i, j, k: (i, j)),   # mem (state)
        ],
        out_specs=pl.BlockSpec((tm, tn), lambda i, j, k: (i, j)),
        scratch_shapes=[pltpu.VMEM((tm, tn), jnp.float32)],
        input_output_aliases={4: 0},
        compiler_params=pltpu.CompilerParams(
            dimension_semantics=("parallel", "parallel", "arbitrary"),
            vmem_limit_bytes=vmem_limit),
    )(x, w_kn, b_2d, tau_2d, mem)


# ---------------------------------------------------------------------------
# References + demo
# ---------------------------------------------------------------------------

def reference_forward(input_spike, weight, bias, tau_m, mem,
                      *, matmul_dtype=jnp.float32):
    """Pure-JAX reference. matmul_dtype=bf16 mirrors the kernel's MXU numerics."""
    x = input_spike.astype(matmul_dtype)
    w = weight.T.astype(matmul_dtype)
    d = jnp.dot(x, w, preferred_element_type=jnp.float32) + bias.astype(jnp.float32)
    alpha = jax.nn.sigmoid(tau_m.astype(jnp.float32))[None, :]
    return mem.astype(jnp.float32) * alpha + (1.0 - alpha) * d


if __name__ == "__main__":
    key = jax.random.PRNGKey(0)
    k_x, k_w, k_b, k_tau, k_mem = jax.random.split(key, 5)

    batch, input_dim, output_dim = 16, 384, 256

    # Binary input spikes from the previous SNN layer (f32, as in .float()).
    input_spike = (jax.random.uniform(k_x, (batch, input_dim)) < 0.3
                   ).astype(jnp.float32)
    # nn.Linear default init: U(-1/sqrt(in), 1/sqrt(in))
    lim = 1.0 / (input_dim ** 0.5)
    weight = jax.random.uniform(k_w, (output_dim, input_dim), jnp.float32,
                                -lim, lim)
    bias = jax.random.uniform(k_b, (output_dim,), jnp.float32, -lim, lim)
    # nn.init.uniform_(tau_m, 0.0, 4.0)
    tau_m = jax.random.uniform(k_tau, (output_dim,), jnp.float32, 0.0, 4.0)
    # set_neuron_state: mem = torch.rand(batch, output_dim)
    mem = jax.random.uniform(k_mem, (batch, output_dim), jnp.float32)

    # One-time parameter prep (layout + dtype) — outside the per-timestep path.
    w_kn, b_2d, tau_2d = prepare_readout_params(weight, bias, tau_m)

    # Compute references BEFORE the kernel call (mem's buffer is donated).
    ref_exact = reference_forward(input_spike, weight, bias, tau_m, mem,
                                  matmul_dtype=jnp.bfloat16)   # kernel numerics
    ref_f32 = reference_forward(input_spike, weight, bias, tau_m, mem,
                                matmul_dtype=jnp.float32)      # module semantics

    mem_new = readout_integrator_forward(input_spike, w_kn, b_2d, tau_2d, mem)
    jax.block_until_ready(mem_new)

    assert mem_new.shape == (batch, output_dim)
    err_exact = float(jnp.max(jnp.abs(mem_new - ref_exact)))
    err_f32 = float(jnp.max(jnp.abs(mem_new - ref_f32)))
    # Strict: kernel matches the matched-precision (bf16 MXU, f32 acc) reference.
    assert jnp.allclose(mem_new, ref_exact, atol=1e-4, rtol=1e-4), err_exact
    # Loose: kernel matches the full-f32 module semantics (bf16-weight drift only).
    assert jnp.allclose(mem_new, ref_f32, atol=2e-2, rtol=2e-2), err_f32

    print("KERNEL_OK")
</pallas_src>

<mosaic_0001>
module attributes {stable_mosaic.version = 11 : i64} {
  func.func @_readout_kernel_single_k(%arg0: i32, %arg1: i32, %arg2: memref<16x384xbf16, #tpu.memory_space<vmem>>, %arg3: memref<384x128xbf16, #tpu.memory_space<vmem>>, %arg4: memref<1x128xf32, #tpu.memory_space<vmem>>, %arg5: memref<1x128xf32, #tpu.memory_space<vmem>>, %arg6: memref<16x128xf32, #tpu.memory_space<vmem>>, %arg7: memref<16x128xf32, #tpu.memory_space<vmem>>) attributes {dimension_semantics = [#tpu.dimension_semantics<parallel>, #tpu.dimension_semantics<parallel>], iteration_bounds = array<i64: 1, 2>, scalar_prefetch = 0 : i64, scratch_operands = 0 : i64, tpu.core_type = #tpu.core_type<tc>, window_params = [{transform_indices = @transform_0, window_bounds = array<i64: 16, 384>}, {transform_indices = @transform_1, window_bounds = array<i64: 384, 128>}, {transform_indices = @transform_2, window_bounds = array<i64: 1, 128>}, {transform_indices = @transform_3, window_bounds = array<i64: 1, 128>}, {transform_indices = @transform_4, window_bounds = array<i64: 16, 128>}, {transform_indices = @transform_5, window_bounds = array<i64: 16, 128>}]} {
    %c0 = arith.constant 0 : index
    %c0_0 = arith.constant 0 : index
    %0 = vector.load %arg2[%c0, %c0_0] : memref<16x384xbf16, #tpu.memory_space<vmem>>, vector<16x384xbf16>
    %c0_1 = arith.constant 0 : index
    %c0_2 = arith.constant 0 : index
    %1 = vector.load %arg3[%c0_1, %c0_2] : memref<384x128xbf16, #tpu.memory_space<vmem>>, vector<384x128xbf16>
    %cst = arith.constant dense<0.000000e+00> : vector<16x128xf32>
    %2 = tpu.matmul %0, %1, %cst {dimension_numbers = #tpu.dot_dimension_numbers<[1], [0], [0], [1], [0, 0, 1, 1], [], []>} : vector<16x384xbf16>, vector<384x128xbf16>, vector<16x128xf32> -> vector<16x128xf32>
    %c0_3 = arith.constant 0 : index
    %c0_4 = arith.constant 0 : index
    %3 = vector.load %arg4[%c0_3, %c0_4] : memref<1x128xf32, #tpu.memory_space<vmem>>, vector<1x128xf32>
    %4 = vector.broadcast %3 : vector<1x128xf32> to vector<16x128xf32>
    %5 = arith.addf %2, %4 : vector<16x128xf32>
    %c0_5 = arith.constant 0 : index
    %c0_6 = arith.constant 0 : index
    %6 = vector.load %arg5[%c0_5, %c0_6] : memref<1x128xf32, #tpu.memory_space<vmem>>, vector<1x128xf32>
    %7 = arith.negf %6 : vector<1x128xf32>
    %8 = math.exp %7 : vector<1x128xf32>
    %cst_7 = arith.constant 1.000000e+00 : f32
    %9 = vector.broadcast %cst_7 : f32 to vector<1x128xf32>
    %10 = arith.addf %9, %8 : vector<1x128xf32>
    %11 = arith.divf %9, %10 : vector<1x128xf32>
    %c0_8 = arith.constant 0 : index
    %c0_9 = arith.constant 0 : index
    %12 = vector.load %arg6[%c0_8, %c0_9] : memref<16x128xf32, #tpu.memory_space<vmem>>, vector<16x128xf32>
    %13 = arith.subf %12, %5 : vector<16x128xf32>
    %14 = vector.broadcast %11 : vector<1x128xf32> to vector<16x128xf32>
    %15 = arith.mulf %14, %13 : vector<16x128xf32>
    %16 = arith.addf %5, %15 : vector<16x128xf32>
    %c0_10 = arith.constant 0 : index
    %c0_11 = arith.constant 0 : index
    %17 = vector.load %arg7[%c0_10, %c0_11] : memref<16x128xf32, #tpu.memory_space<vmem>>, vector<16x128xf32>
    tpu.vector_store %arg7[%c0_10, %c0_11], %16 {strides = array<i32>} : memref<16x128xf32, #tpu.memory_space<vmem>>, vector<16x128xf32>,
    return
  }
  func.func @transform_0(%arg0: i32, %arg1: i32) -> (i32, i32) {
    %c0_i32 = arith.constant 0 : i32
    %c0_i32_0 = arith.constant 0 : i32
    return %arg0, %c0_i32 : i32, i32
  }
  func.func @transform_1(%arg0: i32, %arg1: i32) -> (i32, i32) {
    %c0_i32 = arith.constant 0 : i32
    %c0_i32_0 = arith.constant 0 : i32
    return %c0_i32, %arg1 : i32, i32
  }
  func.func @transform_2(%arg0: i32, %arg1: i32) -> (i32, i32) {
    %c0_i32 = arith.constant 0 : i32
    %c0_i32_0 = arith.constant 0 : i32
    return %c0_i32, %arg1 : i32, i32
  }
  func.func @transform_3(%arg0: i32, %arg1: i32) -> (i32, i32) {
    %c0_i32 = arith.constant 0 : i32
    %c0_i32_0 = arith.constant 0 : i32
    return %c0_i32, %arg1 : i32, i32
  }
  func.func @transform_4(%arg0: i32, %arg1: i32) -> (i32, i32) {
    %c0_i32 = arith.constant 0 : i32
    return %arg0, %arg1 : i32, i32
  }
  func.func @transform_5(%arg0: i32, %arg1: i32) -> (i32, i32) {
    %c0_i32 = arith.constant 0 : i32
    return %arg0, %arg1 : i32, i32
  }
}

</mosaic_0001>

<bundles_post_ra>
// kernel: tpu_custom_call.1
= control target key start
LH: loop header
LB: loop body
LE: loop exit
PB: predicated region body
PF: predicated region fallthrough
CT: control target
= control target key end

     0   :  { %s1441_s0 = inlined_call_operand.vmem [shape: bf16[16,384], index: 0, kind: input, shape index: {}]   ;;  %s1442_s1 = inlined_call_operand.hbm [shape: bf16[384,256], index: 1, kind: input, shape index: {}]   ;;  %s1443_s2 = inlined_call_operand.vmem [shape: f32[1,256], index: 2, kind: input, shape index: {}]   ;;  %s1444_s3 = inlined_call_operand.vmem [shape: f32[1,256], index: 3, kind: input, shape index: {}]   ;;  %s1445_s4 = inlined_call_operand.hbm [shape: f32[16,256], index: 4, kind: input, shape index: {}, may-alias: {4,5}]   ;;  %s1446_s5 = inlined_call_operand.hbm [shape: f32[16,256], index: 5, kind: output, shape index: {}, may-alias: {4,5}]  }
   0x1   :  { %1450 = sst [smem:[#allocation15_spill]] %s1442_s1 }
   0x2   :  { %10 = vsyncpa [#allocation3], 0 }
   0x3   :  { %12 = vsyncpa [#allocation3 + $0x1], 0 }
   0x4   :  { %13 = vsyncpa [#allocation6], 0 }
   0x5   :  { %15 = vsyncpa [#allocation6 + $0x1], 0 }
   0x6   :  { %16 = vsyncpa [#allocation4], 0 }
   0x7   :  { %18 = vsyncpa [#allocation4 + $0x1], 0  ;;  %s1228_s18 = smov 0   ;;  %s1230_s19 = smov 0  }
   0x8   :  { %s1232_s20 = smov 0   ;;  %s1234_s21 = smov 0  }
   0x9   :  { %s1236_s22 = smov 0   ;;  %s1238_s23 = smov 0  }
   0xa LB: > { %1451 = sst [smem:[#allocation11_spill]] %s1176_s20  ;;  %s809_s24 = sadd.s32 4294967295, %s1188_s23   ;;  %s1188_s23 = sphi %s1238_s23, %s24_s23   ;;  %s1184_s22 = sphi %s1236_s22, %s1468_s22   ;;  %s1180_s21 = sphi %s1234_s21, %s1467_s21   ;;  %s1176_s20 = sphi %s1232_s20, %s1463_s20   ;;  %s1172_s19 = sphi %s1230_s19, %s1466_s19   ;;  %s1168_s18 = sphi %s1228_s18, %s1465_s18  }
   0xb   : > { %s810_s25 = sadd.s32 4294967294, %s1188_s23   ;;  %s33_s26 = sadd.s32 1, %s1184_s22 }
   0xc   : > { %s69_s27 = sadd.s32 1, %s1176_s20  ;;  %p34_p0 = scmp.ge.s32.totalorder %s33_s26, 2 }
   0xd   : > { %p76_p1 = scmp.ne.s32.totalorder %s1176_s20, %s1172_s19  ;;  %p77_p2 = scmp.eq.s32.totalorder %s1188_s23, 0 }
   0xe   : > { %p82_p3 = scmp.ne.s32.totalorder %s1172_s19, %s1168_s18  ;;  %s1470_s26 = smov (%p34_p0, %s33_s26), 0 }
   0xf   : > { %1452 = sst [smem:[#allocation12_spill]] %s1470_s26  ;;  %p1269_p4 = por %p77_p2, %p76_p1 }
  0x10   : > { %p83_p5 = scmp.eq.s32.totalorder %s809_s24, 0  ;;  %s66_s29 = ssub.s32 %s1184_s22, %s1470_s26 }
  0x11   : > { %p188_p6 = scmp.eq.s32.totalorder %s809_s24, 1  ;;  %p67_p7 = scmp.eq.s32.totalorder %s66_s29, 0 }
  0x12   : > { %p1275_p8 = por %p83_p5, %p82_p3  ;;  %p194_p10 = scmp.eq.s32.totalorder %s810_s25, 1 }
  0x13   : > { %p1279_p9 = por %p188_p6, %p76_p1  ;;  %p813_p12 = scmp.ge.s32.totalorder %s1188_s23, 2 }
  0x14   : > { %s1284_s7 = scalar_select %p67_p7, %s1176_s20, %s69_s27  }
  0x15   : > { %p1286_p11 = por %p194_p10, %p82_p3  ;;  %p979_p13 = scmp.lt.s32.totalorder %s1188_s23, 2 }
  0x16   : > { %1456 = sst [smem:[#allocation13_spill]] %s1284_s7  ;;  %s1293_s9 = sand.u32 1, %s1176_s20  }
  0x17   : > { %s1457_s8 = scalar_select %p1286_p11, 1, 0 }
  0x18   : > { %s960_s10 = smul.u32 192, %s1293_s9  ;;  %s814_s11 = sshll.u32 %s1184_s22, 2 }
  0x19   : > { %1458 = sst [smem:[#allocation14_spill]] %s1457_s8  ;;  %p1299_p0 = pnand %p979_p13, %p1269_p4 }
  0x1a   : > { %s1460_s1 = sld [smem:[#allocation15_spill]]  ;;  %s228_s17 = scalar_lea.vmem [#allocation2], %s960_s10 }
  0x1b   : > { %s235_s24 = sshll.u32 %s228_s17, 4  ;;  %s225_s25 = scalar_lea.sflag [#allocation3], %s1293_s9  ;;  %s236_s24 = int_to_ptr.vmem [resolvable:$true] %s235_s24 }
  0x1c   : > { %s1190_s27 = smov 128   ;;  %s1191_s29 = smov 64  }
  0x1d   : > { %s1192_s28 = smov 4   ;;  %p817_p1 = scmp.ge.s32.totalorder %s1188_s23, 1 }
  0x1e   : > { %p279_p2 = scmp.lt.s32.totalorder %s1188_s23, 3  ;;  %s815_s26 = sshll.u32 %s1293_s9, 4 }
  0x1f   : > { %s816_s13 = sshll.u32 %s1184_s22, 3  ;;  %s261_s14 = scalar_lea.vmem [#allocation5], %s815_s26 }
  0x20   : > { %s232_s15 = scalar_lea.hbm %s1460_s1, %s814_s11  ;;  %p280_p3 = pnand %p817_p1, %p279_p2 }
  0x21   : > { %s233_s16 = sshll.u32 %s232_s15, 4  ;;  %s271_s11 = sshll.u32 %s261_s14, 4  ;;  %s234_s16 = int_to_ptr.hbm [resolvable:$true] %s233_s16  ;;  %s272_s11 = int_to_ptr.vmem [resolvable:$true] %s271_s11 }
  0x22   : > { %971 = dma.hbm_to_vmem [thread:$0]  (!%p1299_p0), %s234_s16, 3072, %s236_s24, %s225_s25, %s1190_s27, %s1191_s29, %s1192_s28  }
  0x23   : > { %s268_s17 = scalar_lea.hbm %s1445_s4, %s816_s13  ;;  %s258_s7 = scalar_lea.sflag [#allocation6], %s1293_s9 }
  0x24   : > { %s269_s1 = sshll.u32 %s268_s17, 4  ;;  %s1193_s20 = smov 256   ;;  %s270_s1 = int_to_ptr.hbm [resolvable:$true] %s269_s1 }
  0x25   : > { %s1194_s8 = smov 8   ;;  %283 = sbr.rel (%p280_p3) target bundleno = 234 (0xea), region = 40 }
  0x26   : > { %974 = dma.hbm_to_vmem [thread:$0]  (!%p1299_p0), %s270_s1, 256, %s272_s11, %s258_s7, %s1193_s20, %s1190_s27, %s1194_s8  }
  0x27   : > { %s1320_s16 = sand.u32 (!%p280_p3), 1, %s1172_s19  }
  0x28   : > { %s961_s26 = smul.u32 (!%p280_p3), 192, %s1320_s16  ;;  %s286_s24 = scalar_lea.sflag (!%p280_p3), [#allocation3], %s1320_s16 }
  0x2a   : > { %s1324_s25 = scalar_lea.vmem [#allocation2], %s961_s26 }
  0x2b   : > { %1155 = dma.done.wait (%p1275_p8), %s286_s24, 3072  }
  0x2c   : > { %1157 = vsyncadd (%p1275_p8), %s286_s24, 4294964224  ;;  %s818_s1 = sshll.u32 %s1320_s16, 4  ;;  %s296_s20 = scalar_lea.sflag [#allocation6], %s1320_s16 }
  0x2d   : > { %s1334_s7 = scalar_lea.vmem [#allocation5], %s818_s1 }
  0x2e   : > { %1159 = dma.done.wait (%p1275_p8), %s296_s20, 256  }
  0x2f   : > { %1161 = vsyncadd (%p1275_p8), %s296_s20, 4294967040  ;;  %v943_v0 = vld [vmem:[%s1324_s25 + $0x38] sm:$0xff]  ;;  %v942_v3 = vld [vmem:[%s1324_s25 + $0x30] sm:$0xff]  ;;  %p351_p4 = scmp.lt.s32.totalorder %s1180_s21, 1  ;;  %s343_s14 = scalar_lea.vmem [#allocation7], %s818_s1 }
  0x30   : > { %v951_v1 = vld [vmem:[%s1324_s25 + $0x78] sm:$0xff]  ;;  %575 = vmatpush.bf16.msra.mxu0 %v943_v0  ;;  %v950_v4 = vld [vmem:[%s1324_s25 + $0x70] sm:$0xff]  ;;  %v941_v6 = vld [vmem:[%s1324_s25 + $0x28] sm:$0xff]  ;;  %s665_s11 = sshll.u32 %s343_s14, 4  ;;  %s1122_s26 = scalar_lea.hbm %s1446_s5, 32  ;;  %s666_s11 = int_to_ptr.vmem [resolvable:$true] %s665_s11 }
  0x31   : > { %v959_v2 = vld [vmem:[%s1324_s25 + $0xb8] sm:$0xff]  ;;  %589 = vmatpush.bf16.msra.mxu1 %v951_v1  ;;  %v958_v5 = vld [vmem:[%s1324_s25 + $0xb0] sm:$0xff]  ;;  %v949_v7 = vld [vmem:[%s1324_s25 + $0x68] sm:$0xff]  ;;  %s1351_s30 = scalar_select %p351_p4, %s1180_s21, 1 }
  0x32   : > { %603 = vmatpush.bf16.msra.mxu2 %v959_v2  ;;  %v957_v8 = vld [vmem:[%s1324_s25 + $0xa8] sm:$0xff]  ;;  %v940_v9 = vld [vmem:[%s1324_s25 + $0x20] sm:$0xff]  ;;  %v939_v12 = vld [vmem:[%s1324_s25 + $0x18] sm:$0xff] }
  0x33   : > { %s353_s12 = scalar_lea.vmem %s1443_s2, %s1351_s30  ;;  %v948_v10 = vld [vmem:[%s1324_s25 + $0x60] sm:$0xff]  ;;  %v947_v13 = vld [vmem:[%s1324_s25 + $0x58] sm:$0xff]  ;;  %v938_v15 = vld [vmem:[%s1324_s25 + $0x10] sm:$0xff]  ;;  %s356_s9 = scalar_lea.vmem %s1444_s3, %s1351_s30 }
  0x34   : > { %576 = vmatpush.bf16.msra.mxu0 %v942_v3  ;;  %v956_v11 = vld [vmem:[%s1324_s25 + $0xa0] sm:$0xff]  ;;  %v955_v14 = vld [vmem:[%s1324_s25 + $0x98] sm:$0xff]  ;;  %v946_v16 = vld [vmem:[%s1324_s25 + $0x50] sm:$0xff]  ;;  %s930_s30 = sshll.u32 %s1180_s21, 3  ;;  %s651_s21 = scalar_lea.sflag [#allocation4], %s1320_s16 }
  0x35   : > { %590 = vmatpush.bf16.msra.mxu1 %v950_v4  ;;  %v954_v17 = vld [vmem:[%s1324_s25 + $0x90] sm:$0xff]  ;;  %v937_v18 = vld [vmem:[%s1324_s25 + $0x8] sm:$0xff]  ;;  %v936_v21 = vld [vmem:[%s1324_s25] sm:$0xff]  ;;  %s664_s13 = scalar_lea.hbm %s1446_s5, %s930_s30 }
  0x36   : > { %604 = vmatpush.bf16.msra.mxu2 %v958_v5  ;;  %v945_v19 = vld [vmem:[%s1324_s25 + $0x48] sm:$0xff]  ;;  %v944_v22 = vld [vmem:[%s1324_s25 + $0x40] sm:$0xff]  ;;  %v824_v26 = vld [vmem:[%s1441_s0 + $0xc] sm:$0xf0]  ;;  %s667_s15 = sshll.u32 %s664_s13, 4  ;;  %s668_s15 = int_to_ptr.hbm [resolvable:$true] %s667_s15 }
  0x37   : > { %v953_v20 = vld [vmem:[%s1324_s25 + $0x88] sm:$0xff]  ;;  %v822_v23 = vld [vmem:[%s1441_s0] sm:$0xf]  ;;  %v933_v25 = vld [vmem:[%s1441_s0 + $0x4] sm:$0xf]  ;;  %s1116_s10 = sshra.s32 %s668_s15, 4  ;;  %s1117_s10 = int_to_ptr.hbm [resolvable:$true] %s1116_s10 }
  0x38   : > { %577 = vmatpush.bf16.msra.mxu0 %v941_v6  ;;  %v934_v24 = vld [vmem:[%s1441_s0 + $0x8] sm:$0xf0]  ;;  %v952_v27 = vld [vmem:[%s1324_s25 + $0x80] sm:$0xff]  ;;  %v830_v28 = vld [vmem:[%s1441_s0 + $0x8] sm:$0xf]  ;;  %v827_v31 = vor.u32 %v933_v25, %v824_v26  ;;  %p1123_p8 = scmp.lt.s32.totalorder %s1117_s10, %s1446_s5 }
  0x39   : > { %591 = vmatpush.bf16.msra.mxu1 %v949_v7  ;;  %v935_v29 = vld [vmem:[%s1441_s0 + $0x10] sm:$0xf0]  ;;  %v823_v30 = vor.u32 %v934_v24, %v822_v23  ;;  %v617_v33 = vld [vmem:[%s356_s9] sm:$0x1]  ;;  %v638_v0 = vld [vmem:[%s1334_s7 + $0x8] sm:$0xff] }
  0x3a   : > { %605 = vmatpush.bf16.msra.mxu2 %v957_v8  ;;  %v831_v32 = vor.u32 %v935_v29, %v830_v28  ;;  %v928_v34 = vmul.f32 -1.442695, %v617_v33  ;;  %v1037_v41 = vld [vmem:[%s353_s12] ss:$0 sm:$0xff] }
  0x3b   : > { %v637_v53 = vld [vmem:[%s1334_s7] sm:$0xff]  ;;  %s1118_s7 = scalar_lea.hbm %s1117_s10, 16 }
  0x3c   : > { %578 = vmatpush.bf16.msra.mxu0 %v940_v9  ;;  %1038 = vpow2.f32 %v928_v34  ;;  %p1119_p5 = scmp.ne.s32.totalorder %s1117_s10, %s1118_s7  ;;  %p1124_p10 = scmp.lt.s32.totalorder %s1122_s26, %s1118_s7 }
  0x3d   : > { %592 = vmatpush.bf16.msra.mxu1 %v948_v10 }
  0x3e   : > { %606 = vmatpush.bf16.msra.mxu2 %v956_v11  ;;  %p1120_p6 = pnand %p1119_p5, %p1279_p9  ;;  %p1125_p13 = por %p1124_p10, %p1123_p8 }
  0x40   : > { %579 = vmatpush.bf16.msra.mxu0 %v939_v12  ;;  %p1121_p7 = pneg %p1120_p6 }
  0x41   : > { %593 = vmatpush.bf16.msra.mxu1 %v947_v13 }
  0x42   : > { %607 = vmatpush.bf16.msra.mxu2 %v955_v14  ;;  %v1039_v35 = vpop.eup %1038  ;;  %p1126_p0 = pnand %p1125_p13, %p1121_p7 }
  0x43   : > { %v621_v36 = vadd.f32 1.0, %v1039_v35 }
  0x44   : > { %580 = vmatpush.bf16.msra.mxu0 %v938_v15 }
  0x45   : > { %594 = vmatpush.bf16.msra.mxu1 %v946_v16  ;;  %1040 = vrcp.f32 %v621_v36  ;;  %vm627_vm0 = vweird.f32 %v621_v36  ;;  %v633_v42 = vand.u32 2147483648, %v621_v36  ;;  %v631_v44 = vand.u32 2147483647, %v621_v36 }
  0x46   : > { %608 = vmatpush.bf16.msra.mxu2 %v954_v17 }
  0x47   : > { %v634_v47 = vor.u32 1.1754944e-38, %v633_v42  ;;  %vm632_vm3 = vcmp.eq.f32.partialorder %v631_v44, 8.507059e+37 }
  0x48   : > { %581 = vmatpush.bf16.msra.mxu0 %v937_v18 }
  0x49   : > { %595 = vmatpush.bf16.msra.mxu1 %v945_v19 }
  0x4a   : > { %609 = vmatpush.bf16.msra.mxu2 %v953_v20 }
  0x4b   : > { %v1041_v37 = vpop.eup %1040 }
  0x4c   : > { %582 = vmatpush.bf16.msra.mxu0 %v936_v21  ;;  %v623_v38 = vmul.f32 %v1041_v37, %v621_v36  ;;  %vm628_vm1 = vweird.f32 %v1041_v37 }
  0x4d   : > { %596 = vmatpush.bf16.msra.mxu1 %v944_v22  ;;  %vm629_vm2 = vmor %vm627_vm0, %vm628_vm1 }
  0x4e   : > { %610 = vmatpush.bf16.msra.mxu2 %v952_v27  ;;  %v624_v39 = vsub.f32 1.0, %v623_v38 }
  0x4f   : > { %583 = vmatmul.bf16.vlgmr.msra.gmra.mxu0 %v823_v30 }
  0x50   : > { %597 = vmatmul.bf16.vlgmr.msra.gmra.mxu1 %v827_v31  ;;  %v625_v40 = vmul.f32 %v1041_v37, %v624_v39 }
  0x51   : > { %611 = vmatmul.bf16.vlgmr.msra.gmra.mxu2 %v831_v32 }
  0x52   : > { %v626_v43 = vadd.f32 %v1041_v37, %v625_v40 }
  0x54   : > { %v630_v48 = vsel %vm629_vm2, %v1041_v37, %v626_v43 }
  0x55   : > { %v635_v51 = vsel %vm632_vm3, %v634_v47, %v630_v48 }
  0x56   : > { %v642_v55 = vperm.slane %v635_v51, 0 }
  0xcc   : > { %v584_v45 = vpop.f32.mrf.mxu0 }
  0xcd   : > { %v585_v46 = vadd.f32 %v1037_v41, %v584_v45  ;;  %v598_v49 = vpop.f32.mrf.mxu1 }
  0xcf   : > { %v599_v50 = vadd.f32 %v598_v49, %v585_v46 }
  0xd4   : > { %v612_v52 = vpop.f32.mrf.mxu2  ;;  %v586_v56 = vpop.f32.mrf.mxu0 }
  0xd5   : > { %v613_v54 = vadd.f32 %v612_v52, %v599_v50  ;;  %v587_v58 = vadd.f32 %v1037_v41, %v586_v56  ;;  %v600_v60 = vpop.f32.mrf.mxu1 }
  0xd7   : > { %v639_v57 = vsub.f32 %v637_v53, %v613_v54  ;;  %v601_v62 = vadd.f32 %v600_v60, %v587_v58 }
  0xd9   : > { %v644_v59 = vmul.f32 %v642_v55, %v639_v57 }
  0xdb   : > { %v646_v61 = vadd.f32 %v644_v59, %v613_v54 }
  0xdc   : > { %v614_v63 = vpop.f32.mrf.mxu2 }
  0xdd   : > { %648 = vst [vmem:[%s343_s14] sm:$0xff] %v646_v61  ;;  %v615_v1 = vadd.f32 %v614_v63, %v601_v62 }
  0xdf   : > { %v640_v2 = vsub.f32 %v638_v0, %v615_v1 }
  0xe1   : > { %v645_v3 = vmul.f32 %v642_v55, %v640_v2 }
  0xe3   : > { %v647_v4 = vadd.f32 %v645_v3, %v615_v1 }
  0xe5   : > { %649 = vst [vmem:[%s343_s14 + $0x8] sm:$0xff] %v647_v4 }
  0xe6   : > { %1129 = shalt.err (!%p1126_p0)
}
  0xe7   : > { %s1195_s16 = smov 128   ;;  %s1196_s8 = smov 256  }
  0xe8   : > { %s1197_s25 = smov 8  }
  0xe9   : > { %966 = dma.vmem_to_hbm [thread:$0]  (%p1279_p9), %s666_s11, 256, %s668_s15, %s651_s21, %s1195_s16, %s1196_s8, %s1197_s25  }
  0xea PF: > { %s682_s27 = sand.u32 1, %s1168_s18   ;;  %p976_p1 = pnand %p813_p12, %p1286_p11 }
  0xeb   : > { %s683_s29 = scalar_lea.sflag [#allocation4], %s682_s27 }
  0xec   : > { %p977_p2 = pneg %p976_p1 }
  0xee   : > { %1163 = dma.done.wait (%p977_p2), %s683_s29, 256  }
  0xef   : > { %1165 = vsyncadd (%p977_p2), %s683_s29, 4294967040  ;;  %s24_s23 = sadd.s32 1, %s1188_s23   ;;  %s1462_s30 = sld [smem:[#allocation11_spill]] }
  0xf0   : > { %p21_p3 = scmp.ge.s32.totalorder %s24_s23, 4   ;;  %s1463_s20 = sld [smem:[#allocation13_spill]] }
  0xf1   : > { %s1464_s6 = sld [smem:[#allocation12_spill]]  ;;  %s1465_s18 = smov %s1172_s19 }
  0xf2   : > { %s1467_s21 = smov %s1184_s22 }
  0xf3   :  { %23 = sbr.rel (!%p21_p3) target bundleno = 10 (0xa), region = 107 }
  0xf5   : > { %s1466_s19 = smov %s1462_s30 }
  0xf7   : > { %s1468_s22 = smov %s1464_s6 }
  0xf8   :  { %689 = vsyncpa [#allocation3], 1 }
  0xf9   :  { %691 = vsyncpa [#allocation3 + $0x1], 1 }
  0xfa   :  { %692 = vsyncpa [#allocation6], 1 }
  0xfb   :  { %694 = vsyncpa [#allocation6 + $0x1], 1 }
  0xfc   :  { %695 = vsyncpa [#allocation4], 1 }
  0xfd   :  { %697 = vsyncpa [#allocation4 + $0x1], 1 }

</bundles_post_ra>
